<compile_context>
chip_gen: v7x
topology: tpu7x:2x2x1
jax: 0.10.0
libtpu: 0.0.40
codegen_flags: <defaults>
</compile_context>

<pallas_src>
import functools

import numpy as np
import jax
import jax.numpy as jnp
from jax.experimental import pallas as pl
from jax.experimental.pallas import tpu as pltpu


def _gde_kernel(t_ref, x_ref, h_ref, tew_ref, teb_ref, w10_ref, selw_ref,
                w3r_ref, w2h_ref, w2c0_ref, bsT_ref, vsT_ref, chebT_ref,
                thcat_ref, out_ref, *, Bb, N, F, K):
    f32 = jnp.float32
    # t is an SMEM scalar; time-embedding columns are pre-scaled in prepare_params:
    #   col0: ti        col1: (sum_h W1[1+h])*ti        col2: (sum_f W3[f])*ti
    tval = t_ref[0]
    ti = tval * tew_ref[...] + teb_ref[...]                      # (N, 3)
    if Bb > 1:                                                   # tile across stacked batches
        ti = jnp.concatenate([ti] * Bb, axis=0)                  # (Bb*N, 3) sublane copies
    ti0, ti1, ti3 = ti[:, 0:1], ti[:, 1:2], ti[:, 2:3]

    xv = x_ref[...]                                              # (Bb*N, F)
    hv = h_ref[...]                                              # (Bb*N, F*H)

    # graph signal at time step 0
    gs = xv + ti0                                                # (Bb*N, F)

    # ---- batch-stacked shared-weight matmuls (one MXU push each) ----
    hsum = jnp.dot(hv, selw_ref[...], preferred_element_type=f32)    # (Bb*N, F+H)
    hsum1 = hsum[:, :F]                                          # sum_h W1[1+h]*h0[..,f,h]
    hsum3 = hsum[:, F:]                                          # sum_f W3[f]*h0[..,f,h]

    lhs1 = gs * w10_ref[...] + hsum1 + ti1                       # (Bb*N, F)
    lhs2h = jnp.dot(lhs1, w2h_ref[...], preferred_element_type=f32)  # (Bb*N, H)
    lhs20 = jnp.sum(lhs1 * w2c0_ref[...], axis=1, keepdims=True)     # (Bb*N, 1)  VPU

    rhsH = hsum3 + ti3                                           # (Bb*N, H)
    rhs0 = jnp.sum(gs * w3r_ref[...], axis=1, keepdims=True)     # (Bb*N, 1)  VPU

    gsth = jnp.dot(gs, thcat_ref[...], preferred_element_type=f32)   # (Bb*N, K*F)

    # ---- per-batch attention + Chebyshev conv (static unroll: VLIW interleave) ----
    for b in range(Bb):
        r0, r1 = b * N, (b + 1) * N
        # prod^T = rhs @ lhs2^T, built without any lane concat:
        # hidden-part NT dot + rank-1 (time-0) dot, issued independently.
        prodT = jax.lax.dot_general(rhsH[r0:r1], lhs2h[r0:r1],
                                    (((1,), (1,)), ((), ())),
                                    preferred_element_type=f32)       # (N, N)
        prodT = prodT + jax.lax.dot_general(rhs0[r0:r1], lhs20[r0:r1],
                                            (((1,), (1,)), ((), ())),
                                            preferred_element_type=f32)
        sT = jnp.dot(jax.nn.sigmoid(prodT + bsT_ref[...]), vsT_ref[...],
                     preferred_element_type=f32)                      # (N, N)
        # torch softmax(dim=1) == softmax over the last axis of s^T.
        # Exact max-sub + exact divide kept (approx reciprocal risks the 1e-4 check).
        m = jnp.max(sT, axis=-1, keepdims=True)
        e = jnp.exp(sT - m)
        sattT = e / jnp.sum(e, axis=-1, keepdims=True)                # (N, N)

        # cheb conv with SAt: K accumulating (N,N)@(N,F) dots — no concat temps.
        acc = jnp.dot(chebT_ref[0] * sattT, gsth[r0:r1, 0:F],
                      preferred_element_type=f32)                     # (N, F)
        for k in range(1, K):
            acc = acc + jnp.dot(chebT_ref[k] * sattT,
                                gsth[r0:r1, k * F:(k + 1) * F],
                                preferred_element_type=f32)
        out_ref[r0:r1, :] = jnp.maximum(acc, 0.0).astype(out_ref.dtype)


def prepare_params(params, N, F, H, K):
    """Build constant / reshaped parameter tensors ONCE (outside per-call path)."""
    dt = jnp.float32
    W1 = params["W1"]                      # (T,)
    W2 = params["W2"]                      # (F, T)
    W3 = params["W3"]                      # (F,)
    te_w = params["te_w"][:, 0]            # (N,)  Linear(1, N).weight squeezed
    te_b = params["te_b"]                  # (N,)
    w1h_sum = jnp.sum(W1[1:])
    w3_sum = jnp.sum(W3)
    TE_W = jnp.stack([te_w, w1h_sum * te_w, w3_sum * te_w], axis=1)    # (N, 3)
    TE_B = jnp.stack([te_b, w1h_sum * te_b, w3_sum * te_b], axis=1)    # (N, 3)
    w10 = jnp.broadcast_to(W1[0], (1, F)).astype(dt)                   # (1, F)
    selw1 = jnp.kron(jnp.eye(F, dtype=dt), W1[1:].reshape(H, 1))       # (F*H, F)
    selw3 = jnp.kron(W3.reshape(F, 1), jnp.eye(H, dtype=dt))           # (F*H, H)
    selW = jnp.concatenate([selw1, selw3], axis=1)                     # (F*H, F+H) fused
    cheb = params["cheb"]                  # (K, N, N)
    chebT = jnp.transpose(cheb, (0, 2, 1))                             # (K, N, N), per-k T_k^T
    theta = params["Theta"]                # (K, F, F)
    theta_cat = jnp.concatenate([theta[k] for k in range(K)], axis=1)  # (F, K*F) fused
    # NOTE: all kept f32; bf16 MXU operands skipped to preserve the 1e-4 match.
    return {
        "TE_W": TE_W, "TE_B": TE_B, "w10": w10, "selW": selW,
        "w3row": W3.reshape(1, F),
        "W2h": W2[:, 1:], "w2c0": W2[:, 0].reshape(1, F),
        "bsT": params["bs"].T, "vsT": params["Vs"].T,
        "chebT": chebT, "theta_cat": theta_cat,
    }


def _batch_layout(B):
    """Batches per kernel block / grid size / dimension semantics, per chip."""
    kind = jax.devices()[0].device_kind.lower()
    if B > 1 and ("v7" in kind or "7x" in kind):
        # v7x: 2 TensorCores per chip -> one batch per grid step, sharded across TCs.
        return 1, B, ("parallel",)
    # v5e/v6e: single TC -> fold all batches into one block; static unroll inside.
    return B, 1, ("arbitrary",)


def controlled_gde_forward(t, x, h0, prep):
    """ControlledGDEFunc.forward: x (B,N,F), h0 (B,N,F,H), t scalar -> (B,N,F)."""
    B, N, F = x.shape
    H = h0.shape[-1]
    K = int(prep["chebT"].shape[0])
    dt = x.dtype

    x2 = x.reshape(B * N, F)                        # contiguous reshape, free
    h2 = h0.reshape(B * N, F * H)                   # contiguous reshape, free
    t_arr = jnp.asarray(t, dtype=jnp.float32).reshape(1)

    Bb, nblocks, sem = _batch_layout(B)

    kernel = functools.partial(_gde_kernel, Bb=Bb, N=N, F=F, K=K)
    out2 = pl.pallas_call(
        kernel,
        out_shape=jax.ShapeDtypeStruct((B * N, F), dt),
        grid=(nblocks,),
        in_specs=[
            pl.BlockSpec(memory_space=pltpu.MemorySpace.SMEM),        # t (SMEM scalar)
            pl.BlockSpec((Bb * N, F), lambda i: (i, 0)),              # x, batch-stacked
            pl.BlockSpec((Bb * N, F * H), lambda i: (i, 0)),          # h0, batch-stacked
            pl.BlockSpec((N, 3), lambda i: (0, 0)),                   # TE_W
            pl.BlockSpec((N, 3), lambda i: (0, 0)),                   # TE_B
            pl.BlockSpec((1, F), lambda i: (0, 0)),                   # W1[0] row
            pl.BlockSpec((F * H, F + H), lambda i: (0, 0)),           # fused selw1|selw3
            pl.BlockSpec((1, F), lambda i: (0, 0)),                   # W3 row
            pl.BlockSpec((F, H), lambda i: (0, 0)),                   # W2[:,1:]
            pl.BlockSpec((1, F), lambda i: (0, 0)),                   # W2[:,0] row
            pl.BlockSpec((N, N), lambda i: (0, 0)),                   # bs^T
            pl.BlockSpec((N, N), lambda i: (0, 0)),                   # Vs^T
            pl.BlockSpec((K, N, N), lambda i: (0, 0, 0)),             # cheb^T per k
            pl.BlockSpec((F, K * F), lambda i: (0, 0)),               # hstack(Theta_k)
        ],
        out_specs=pl.BlockSpec((Bb * N, F), lambda i: (i, 0)),
        compiler_params=pltpu.CompilerParams(dimension_semantics=sem),
    )(t_arr, x2, h2, prep["TE_W"], prep["TE_B"], prep["w10"], prep["selW"],
      prep["w3row"], prep["W2h"], prep["w2c0"], prep["bsT"], prep["vsT"],
      prep["chebT"], prep["theta_cat"])
    return out2.reshape(B, N, F)


def reference_forward(t, x, h0, params):
    """Pure-JAX reference mirroring the PyTorch forward semantics."""
    B, N, F = x.shape
    K = params["cheb"].shape[0]
    xc = jnp.concatenate([x[..., None], h0], axis=-1)                    # (B,N,F,T)
    tb = jnp.full((B, 1), t, dtype=x.dtype)
    ti = tb @ params["te_w"].T + params["te_b"][None, :]                 # (B,N)
    xt = xc + ti[:, :, None, None]
    lhs = jnp.einsum("bnft,t->bnf", xt, params["W1"])
    lhs = jnp.einsum("bnf,ft->bnt", lhs, params["W2"])
    rhs = jnp.einsum("f,bnft->bnt", params["W3"], xt)
    prod = jnp.einsum("bnt,bmt->bnm", lhs, rhs)
    s = jnp.einsum("nm,bml->bnl", params["Vs"],
                   jax.nn.sigmoid(prod + params["bs"][None]))
    s_att = jax.nn.softmax(s, axis=1)
    gs = xt[:, :, :, 0]
    out = 0.0
    for k in range(K):
        tk_at = params["cheb"][k][None] * s_att
        rhs_k = jnp.einsum("bij,bif->bjf", tk_at, gs)
        out = out + jnp.einsum("bjf,fg->bjg", rhs_k, params["Theta"][k])
    return jnp.maximum(out, 0.0)


if __name__ == "__main__":
    B, N, F, H, K = 2, 16, 4, 8, 3
    T = H + 1
    key = jax.random.PRNGKey(0)
    ks = jax.random.split(key, 12)
    s = 0.1
    params = {
        "te_w": jax.random.normal(ks[0], (N, 1), jnp.float32) * s,   # Linear(1, N).weight
        "te_b": jax.random.normal(ks[1], (N,), jnp.float32) * s,     # Linear(1, N).bias
        "W1": jax.random.normal(ks[2], (T,), jnp.float32) * s,
        "W2": jax.random.normal(ks[3], (F, T), jnp.float32) * s,
        "W3": jax.random.normal(ks[4], (F,), jnp.float32) * s,
        "bs": jax.random.normal(ks[5], (N, N), jnp.float32) * s,     # torch (1,N,N) squeezed
        "Vs": jax.random.normal(ks[6], (N, N), jnp.float32) * s,
        "Theta": jax.random.normal(ks[7], (K, F, F), jnp.float32) * s,
    }

    # Chebyshev polynomials of the scaled graph Laplacian (constructor glue).
    adj = jax.random.uniform(ks[8], (N, N), jnp.float32)
    adj_np = np.array((adj + adj.T) * 0.5)
    np.fill_diagonal(adj_np, 0.0)
    lap = np.diag(adj_np.sum(1)) - adj_np
    lam = float(np.max(np.linalg.eigvalsh(lap)))
    lap_t = (2.0 / lam) * lap - np.eye(N)
    polys = [np.eye(N), lap_t]
    for _ in range(2, K):
        polys.append(2.0 * lap_t @ polys[-1] - polys[-2])
    params["cheb"] = jnp.asarray(np.stack(polys[:K]), dtype=jnp.float32)

    # Forward inputs: current state x, time t, and hidden state h0.
    # TODO(synk): h0 is produced by init_hidden / Hinit_encoder in the original
    # module; here it is supplied directly as a deterministic input.
    x = jax.random.normal(ks[9], (B, N, F), jnp.float32)
    h0 = jax.random.normal(ks[10], (B, N, F, H), jnp.float32)
    t = 0.37

    prep = prepare_params(params, N, F, H, K)          # one-time constant prep
    # Amortize dispatch: ODE-solver RHS evaluations should call this under one jit
    # with prep kept device-resident; demonstrated here with a jitted wrapper.
    fwd = jax.jit(controlled_gde_forward)
    out = jax.block_until_ready(fwd(t, x, h0, prep))
    ref = reference_forward(t, x, h0, params)
    assert out.shape == (B, N, F)
    np.testing.assert_allclose(np.array(out), np.array(ref), rtol=1e-4, atol=1e-4)
    print("KERNEL_OK")
</pallas_src>

<mosaic_0001>
module attributes {stable_mosaic.version = 11 : i64} {
  func.func @_gde_kernel(%arg0: i32, %arg1: memref<1xf32, #tpu.memory_space<smem>>, %arg2: memref<32x4xf32, #tpu.memory_space<vmem>>, %arg3: memref<32x32xf32, #tpu.memory_space<vmem>>, %arg4: memref<16x3xf32, #tpu.memory_space<vmem>>, %arg5: memref<16x3xf32, #tpu.memory_space<vmem>>, %arg6: memref<1x4xf32, #tpu.memory_space<vmem>>, %arg7: memref<32x12xf32, #tpu.memory_space<vmem>>, %arg8: memref<1x4xf32, #tpu.memory_space<vmem>>, %arg9: memref<4x8xf32, #tpu.memory_space<vmem>>, %arg10: memref<1x4xf32, #tpu.memory_space<vmem>>, %arg11: memref<16x16xf32, #tpu.memory_space<vmem>>, %arg12: memref<16x16xf32, #tpu.memory_space<vmem>>, %arg13: memref<3x16x16xf32, #tpu.memory_space<vmem>>, %arg14: memref<4x12xf32, #tpu.memory_space<vmem>>, %arg15: memref<32x4xf32, #tpu.memory_space<vmem>>) attributes {dimension_semantics = [#tpu.dimension_semantics<arbitrary>], iteration_bounds = array<i64: 1>, scalar_prefetch = 0 : i64, scratch_operands = 0 : i64, tpu.core_type = #tpu.core_type<tc>, window_params = [{transform_indices = @transform_0, window_bounds = array<i64: 1>}, {transform_indices = @transform_1, window_bounds = array<i64: 32, 4>}, {transform_indices = @transform_2, window_bounds = array<i64: 32, 32>}, {pipeline_mode = #tpu.pipeline_mode<synchronous>, transform_indices = @transform_3, window_bounds = array<i64: 16, 3>}, {pipeline_mode = #tpu.pipeline_mode<synchronous>, transform_indices = @transform_4, window_bounds = array<i64: 16, 3>}, {pipeline_mode = #tpu.pipeline_mode<synchronous>, transform_indices = @transform_5, window_bounds = array<i64: 1, 4>}, {pipeline_mode = #tpu.pipeline_mode<synchronous>, transform_indices = @transform_6, window_bounds = array<i64: 32, 12>}, {pipeline_mode = #tpu.pipeline_mode<synchronous>, transform_indices = @transform_7, window_bounds = array<i64: 1, 4>}, {pipeline_mode = #tpu.pipeline_mode<synchronous>, transform_indices = @transform_8, window_bounds = array<i64: 4, 8>}, {pipeline_mode = #tpu.pipeline_mode<synchronous>, transform_indices = @transform_9, window_bounds = array<i64: 1, 4>}, {pipeline_mode = #tpu.pipeline_mode<synchronous>, transform_indices = @transform_10, window_bounds = array<i64: 16, 16>}, {pipeline_mode = #tpu.pipeline_mode<synchronous>, transform_indices = @transform_11, window_bounds = array<i64: 16, 16>}, {pipeline_mode = #tpu.pipeline_mode<synchronous>, transform_indices = @transform_12, window_bounds = array<i64: 3, 16, 16>}, {pipeline_mode = #tpu.pipeline_mode<synchronous>, transform_indices = @transform_13, window_bounds = array<i64: 4, 12>}, {transform_indices = @transform_14, window_bounds = array<i64: 32, 4>}]} {
    %c0 = arith.constant 0 : index
    %0 = memref.load %arg1[%c0] : memref<1xf32, #tpu.memory_space<smem>>
    %c0_0 = arith.constant 0 : index
    %c0_1 = arith.constant 0 : index
    %1 = vector.load %arg4[%c0_0, %c0_1] : memref<16x3xf32, #tpu.memory_space<vmem>>, vector<16x3xf32>
    %2 = vector.broadcast %0 : f32 to vector<16x3xf32>
    %3 = arith.mulf %2, %1 : vector<16x3xf32>
    %c0_2 = arith.constant 0 : index
    %c0_3 = arith.constant 0 : index
    %4 = vector.load %arg5[%c0_2, %c0_3] : memref<16x3xf32, #tpu.memory_space<vmem>>, vector<16x3xf32>
    %5 = arith.addf %3, %4 : vector<16x3xf32>
    %6 = tpu.concatenate %5, %5 in 0 : vector<16x3xf32>, vector<16x3xf32> -> vector<32x3xf32>
    %7 = vector.extract_strided_slice %6 {offsets = [0, 0], sizes = [32, 1], strides = [1, 1]} : vector<32x3xf32> to vector<32x1xf32>
    %8 = vector.extract_strided_slice %6 {offsets = [0, 1], sizes = [32, 1], strides = [1, 1]} : vector<32x3xf32> to vector<32x1xf32>
    %9 = vector.extract_strided_slice %6 {offsets = [0, 2], sizes = [32, 1], strides = [1, 1]} : vector<32x3xf32> to vector<32x1xf32>
    %c0_4 = arith.constant 0 : index
    %c0_5 = arith.constant 0 : index
    %10 = vector.load %arg2[%c0_4, %c0_5] : memref<32x4xf32, #tpu.memory_space<vmem>>, vector<32x4xf32>
    %c0_6 = arith.constant 0 : index
    %c0_7 = arith.constant 0 : index
    %11 = vector.load %arg3[%c0_6, %c0_7] : memref<32x32xf32, #tpu.memory_space<vmem>>, vector<32x32xf32>
    %12 = vector.broadcast %7 : vector<32x1xf32> to vector<32x4xf32>
    %13 = arith.addf %10, %12 : vector<32x4xf32>
    %c0_8 = arith.constant 0 : index
    %c0_9 = arith.constant 0 : index
    %14 = vector.load %arg7[%c0_8, %c0_9] : memref<32x12xf32, #tpu.memory_space<vmem>>, vector<32x12xf32>
    %cst = arith.constant dense<0.000000e+00> : vector<32x12xf32>
    %15 = tpu.matmul %11, %14, %cst {dimension_numbers = #tpu.dot_dimension_numbers<[1], [0], [0], [1], [0, 0, 1, 1], [], []>} : vector<32x32xf32>, vector<32x12xf32>, vector<32x12xf32> -> vector<32x12xf32>
    %16 = vector.extract_strided_slice %15 {offsets = [0, 0], sizes = [32, 4], strides = [1, 1]} : vector<32x12xf32> to vector<32x4xf32>
    %17 = vector.extract_strided_slice %15 {offsets = [0, 4], sizes = [32, 8], strides = [1, 1]} : vector<32x12xf32> to vector<32x8xf32>
    %c0_10 = arith.constant 0 : index
    %c0_11 = arith.constant 0 : index
    %18 = vector.load %arg6[%c0_10, %c0_11] : memref<1x4xf32, #tpu.memory_space<vmem>>, vector<1x4xf32>
    %19 = vector.broadcast %18 : vector<1x4xf32> to vector<32x4xf32>
    %20 = arith.mulf %13, %19 : vector<32x4xf32>
    %21 = arith.addf %20, %16 : vector<32x4xf32>
    %22 = vector.broadcast %8 : vector<32x1xf32> to vector<32x4xf32>
    %23 = arith.addf %21, %22 : vector<32x4xf32>
    %c0_12 = arith.constant 0 : index
    %c0_13 = arith.constant 0 : index
    %24 = vector.load %arg9[%c0_12, %c0_13] : memref<4x8xf32, #tpu.memory_space<vmem>>, vector<4x8xf32>
    %cst_14 = arith.constant dense<0.000000e+00> : vector<32x8xf32>
    %25 = tpu.matmul %23, %24, %cst_14 {dimension_numbers = #tpu.dot_dimension_numbers<[1], [0], [0], [1], [0, 0, 1, 1], [], []>} : vector<32x4xf32>, vector<4x8xf32>, vector<32x8xf32> -> vector<32x8xf32>
    %c0_15 = arith.constant 0 : index
    %c0_16 = arith.constant 0 : index
    %26 = vector.load %arg10[%c0_15, %c0_16] : memref<1x4xf32, #tpu.memory_space<vmem>>, vector<1x4xf32>
    %27 = vector.broadcast %26 : vector<1x4xf32> to vector<32x4xf32>
    %28 = arith.mulf %23, %27 : vector<32x4xf32>
    %cst_17 = arith.constant dense<0.000000e+00> : vector<32xf32>
    %29 = vector.multi_reduction <add>, %28, %cst_17 [1] : vector<32x4xf32> to vector<32xf32>
    %30 = vector.shape_cast %29 : vector<32xf32> to vector<32x1xf32>
    %31 = vector.broadcast %9 : vector<32x1xf32> to vector<32x8xf32>
    %32 = arith.addf %17, %31 : vector<32x8xf32>
    %c0_18 = arith.constant 0 : index
    %c0_19 = arith.constant 0 : index
    %33 = vector.load %arg8[%c0_18, %c0_19] : memref<1x4xf32, #tpu.memory_space<vmem>>, vector<1x4xf32>
    %34 = vector.broadcast %33 : vector<1x4xf32> to vector<32x4xf32>
    %35 = arith.mulf %13, %34 : vector<32x4xf32>
    %cst_20 = arith.constant dense<0.000000e+00> : vector<32xf32>
    %36 = vector.multi_reduction <add>, %35, %cst_20 [1] : vector<32x4xf32> to vector<32xf32>
    %37 = vector.shape_cast %36 : vector<32xf32> to vector<32x1xf32>
    %c0_21 = arith.constant 0 : index
    %c0_22 = arith.constant 0 : index
    %38 = vector.load %arg14[%c0_21, %c0_22] : memref<4x12xf32, #tpu.memory_space<vmem>>, vector<4x12xf32>
    %cst_23 = arith.constant dense<0.000000e+00> : vector<32x12xf32>
    %39 = tpu.matmul %13, %38, %cst_23 {dimension_numbers = #tpu.dot_dimension_numbers<[1], [0], [0], [1], [0, 0, 1, 1], [], []>} : vector<32x4xf32>, vector<4x12xf32>, vector<32x12xf32> -> vector<32x12xf32>
    %40 = vector.extract_strided_slice %32 {offsets = [0, 0], sizes = [16, 8], strides = [1, 1]} : vector<32x8xf32> to vector<16x8xf32>
    %41 = vector.extract_strided_slice %25 {offsets = [0, 0], sizes = [16, 8], strides = [1, 1]} : vector<32x8xf32> to vector<16x8xf32>
    %cst_24 = arith.constant dense<0.000000e+00> : vector<16x16xf32>
    %42 = tpu.matmul %40, %41, %cst_24 {dimension_numbers = #tpu.dot_dimension_numbers<[1], [1], [0], [0], [0, 0, 1, 0], [], []>} : vector<16x8xf32>, vector<16x8xf32>, vector<16x16xf32> -> vector<16x16xf32>
    %43 = vector.extract_strided_slice %37 {offsets = [0, 0], sizes = [16, 1], strides = [1, 1]} : vector<32x1xf32> to vector<16x1xf32>
    %44 = vector.extract_strided_slice %30 {offsets = [0, 0], sizes = [16, 1], strides = [1, 1]} : vector<32x1xf32> to vector<16x1xf32>
    %cst_25 = arith.constant dense<0.000000e+00> : vector<16x16xf32>
    %45 = tpu.matmul %43, %44, %cst_25 {dimension_numbers = #tpu.dot_dimension_numbers<[1], [1], [0], [0], [0, 0, 1, 0], [], []>} : vector<16x1xf32>, vector<16x1xf32>, vector<16x16xf32> -> vector<16x16xf32>
    %46 = arith.addf %42, %45 : vector<16x16xf32>
    %c0_26 = arith.constant 0 : index
    %c0_27 = arith.constant 0 : index
    %47 = vector.load %arg11[%c0_26, %c0_27] : memref<16x16xf32, #tpu.memory_space<vmem>>, vector<16x16xf32>
    %48 = arith.addf %46, %47 : vector<16x16xf32>
    %49 = arith.negf %48 : vector<16x16xf32>
    %50 = math.exp %49 : vector<16x16xf32>
    %cst_28 = arith.constant 1.000000e+00 : f32
    %51 = vector.broadcast %cst_28 : f32 to vector<16x16xf32>
    %52 = arith.addf %51, %50 : vector<16x16xf32>
    %53 = arith.divf %51, %52 : vector<16x16xf32>
    %c0_29 = arith.constant 0 : index
    %c0_30 = arith.constant 0 : index
    %54 = vector.load %arg12[%c0_29, %c0_30] : memref<16x16xf32, #tpu.memory_space<vmem>>, vector<16x16xf32>
    %cst_31 = arith.constant dense<0.000000e+00> : vector<16x16xf32>
    %55 = tpu.matmul %53, %54, %cst_31 {dimension_numbers = #tpu.dot_dimension_numbers<[1], [0], [0], [1], [0, 0, 1, 1], [], []>} : vector<16x16xf32>, vector<16x16xf32>, vector<16x16xf32> -> vector<16x16xf32>
    %cst_32 = arith.constant dense<0xFF800000> : vector<16xf32>
    %56 = vector.multi_reduction <maximumf>, %55, %cst_32 [1] : vector<16x16xf32> to vector<16xf32>
    %57 = vector.shape_cast %56 : vector<16xf32> to vector<16x1xf32>
    %58 = vector.broadcast %57 : vector<16x1xf32> to vector<16x16xf32>
    %59 = arith.subf %55, %58 : vector<16x16xf32>
    %60 = math.exp %59 : vector<16x16xf32>
    %cst_33 = arith.constant dense<0.000000e+00> : vector<16xf32>
    %61 = vector.multi_reduction <add>, %60, %cst_33 [1] : vector<16x16xf32> to vector<16xf32>
    %62 = vector.shape_cast %61 : vector<16xf32> to vector<16x1xf32>
    %63 = vector.broadcast %62 : vector<16x1xf32> to vector<16x16xf32>
    %64 = arith.divf %60, %63 : vector<16x16xf32>
    %c0_34 = arith.constant 0 : index
    %c0_35 = arith.constant 0 : index
    %c0_36 = arith.constant 0 : index
    %65 = vector.load %arg13[%c0_34, %c0_35, %c0_36] : memref<3x16x16xf32, #tpu.memory_space<vmem>>, vector<1x16x16xf32>
    %66 = vector.shape_cast %65 : vector<1x16x16xf32> to vector<16x16xf32>
    %67 = arith.mulf %66, %64 : vector<16x16xf32>
    %68 = vector.extract_strided_slice %39 {offsets = [0, 0], sizes = [16, 4], strides = [1, 1]} : vector<32x12xf32> to vector<16x4xf32>
    %cst_37 = arith.constant dense<0.000000e+00> : vector<16x4xf32>
    %69 = tpu.matmul %67, %68, %cst_37 {dimension_numbers = #tpu.dot_dimension_numbers<[1], [0], [0], [1], [0, 0, 1, 1], [], []>} : vector<16x16xf32>, vector<16x4xf32>, vector<16x4xf32> -> vector<16x4xf32>
    %c1 = arith.constant 1 : index
    %c0_38 = arith.constant 0 : index
    %c0_39 = arith.constant 0 : index
    %70 = vector.load %arg13[%c1, %c0_38, %c0_39] : memref<3x16x16xf32, #tpu.memory_space<vmem>>, vector<1x16x16xf32>
    %71 = vector.shape_cast %70 : vector<1x16x16xf32> to vector<16x16xf32>
    %72 = arith.mulf %71, %64 : vector<16x16xf32>
    %73 = vector.extract_strided_slice %39 {offsets = [0, 4], sizes = [16, 4], strides = [1, 1]} : vector<32x12xf32> to vector<16x4xf32>
    %cst_40 = arith.constant dense<0.000000e+00> : vector<16x4xf32>
    %74 = tpu.matmul %72, %73, %cst_40 {dimension_numbers = #tpu.dot_dimension_numbers<[1], [0], [0], [1], [0, 0, 1, 1], [], []>} : vector<16x16xf32>, vector<16x4xf32>, vector<16x4xf32> -> vector<16x4xf32>
    %75 = arith.addf %69, %74 : vector<16x4xf32>
    %c2 = arith.constant 2 : index
    %c0_41 = arith.constant 0 : index
    %c0_42 = arith.constant 0 : index
    %76 = vector.load %arg13[%c2, %c0_41, %c0_42] : memref<3x16x16xf32, #tpu.memory_space<vmem>>, vector<1x16x16xf32>
    %77 = vector.shape_cast %76 : vector<1x16x16xf32> to vector<16x16xf32>
    %78 = arith.mulf %77, %64 : vector<16x16xf32>
    %79 = vector.extract_strided_slice %39 {offsets = [0, 8], sizes = [16, 4], strides = [1, 1]} : vector<32x12xf32> to vector<16x4xf32>
    %cst_43 = arith.constant dense<0.000000e+00> : vector<16x4xf32>
    %80 = tpu.matmul %78, %79, %cst_43 {dimension_numbers = #tpu.dot_dimension_numbers<[1], [0], [0], [1], [0, 0, 1, 1], [], []>} : vector<16x16xf32>, vector<16x4xf32>, vector<16x4xf32> -> vector<16x4xf32>
    %81 = arith.addf %75, %80 : vector<16x4xf32>
    %cst_44 = arith.constant 0.000000e+00 : f32
    %82 = vector.broadcast %cst_44 : f32 to vector<16x4xf32>
    %83 = arith.maximumf %81, %82 : vector<16x4xf32>
    %c0_45 = arith.constant 0 : index
    %c0_46 = arith.constant 0 : index
    %84 = vector.load %arg15[%c0_45, %c0_46] : memref<32x4xf32, #tpu.memory_space<vmem>>, vector<16x4xf32>
    tpu.vector_store %arg15[%c0_45, %c0_46], %83 {strides = array<i32>} : memref<32x4xf32, #tpu.memory_space<vmem>>, vector<16x4xf32>,
    %85 = vector.extract_strided_slice %32 {offsets = [16, 0], sizes = [16, 8], strides = [1, 1]} : vector<32x8xf32> to vector<16x8xf32>
    %86 = vector.extract_strided_slice %25 {offsets = [16, 0], sizes = [16, 8], strides = [1, 1]} : vector<32x8xf32> to vector<16x8xf32>
    %cst_47 = arith.constant dense<0.000000e+00> : vector<16x16xf32>
    %87 = tpu.matmul %85, %86, %cst_47 {dimension_numbers = #tpu.dot_dimension_numbers<[1], [1], [0], [0], [0, 0, 1, 0], [], []>} : vector<16x8xf32>, vector<16x8xf32>, vector<16x16xf32> -> vector<16x16xf32>
    %88 = vector.extract_strided_slice %37 {offsets = [16, 0], sizes = [16, 1], strides = [1, 1]} : vector<32x1xf32> to vector<16x1xf32>
    %89 = vector.extract_strided_slice %30 {offsets = [16, 0], sizes = [16, 1], strides = [1, 1]} : vector<32x1xf32> to vector<16x1xf32>
    %cst_48 = arith.constant dense<0.000000e+00> : vector<16x16xf32>
    %90 = tpu.matmul %88, %89, %cst_48 {dimension_numbers = #tpu.dot_dimension_numbers<[1], [1], [0], [0], [0, 0, 1, 0], [], []>} : vector<16x1xf32>, vector<16x1xf32>, vector<16x16xf32> -> vector<16x16xf32>
    %91 = arith.addf %87, %90 : vector<16x16xf32>
    %c0_49 = arith.constant 0 : index
    %c0_50 = arith.constant 0 : index
    %92 = vector.load %arg11[%c0_49, %c0_50] : memref<16x16xf32, #tpu.memory_space<vmem>>, vector<16x16xf32>
    %93 = arith.addf %91, %92 : vector<16x16xf32>
    %94 = arith.negf %93 : vector<16x16xf32>
    %95 = math.exp %94 : vector<16x16xf32>
    %cst_51 = arith.constant 1.000000e+00 : f32
    %96 = vector.broadcast %cst_51 : f32 to vector<16x16xf32>
    %97 = arith.addf %96, %95 : vector<16x16xf32>
    %98 = arith.divf %96, %97 : vector<16x16xf32>
    %c0_52 = arith.constant 0 : index
    %c0_53 = arith.constant 0 : index
    %99 = vector.load %arg12[%c0_52, %c0_53] : memref<16x16xf32, #tpu.memory_space<vmem>>, vector<16x16xf32>
    %cst_54 = arith.constant dense<0.000000e+00> : vector<16x16xf32>
    %100 = tpu.matmul %98, %99, %cst_54 {dimension_numbers = #tpu.dot_dimension_numbers<[1], [0], [0], [1], [0, 0, 1, 1], [], []>} : vector<16x16xf32>, vector<16x16xf32>, vector<16x16xf32> -> vector<16x16xf32>
    %cst_55 = arith.constant dense<0xFF800000> : vector<16xf32>
    %101 = vector.multi_reduction <maximumf>, %100, %cst_55 [1] : vector<16x16xf32> to vector<16xf32>
    %102 = vector.shape_cast %101 : vector<16xf32> to vector<16x1xf32>
    %103 = vector.broadcast %102 : vector<16x1xf32> to vector<16x16xf32>
    %104 = arith.subf %100, %103 : vector<16x16xf32>
    %105 = math.exp %104 : vector<16x16xf32>
    %cst_56 = arith.constant dense<0.000000e+00> : vector<16xf32>
    %106 = vector.multi_reduction <add>, %105, %cst_56 [1] : vector<16x16xf32> to vector<16xf32>
    %107 = vector.shape_cast %106 : vector<16xf32> to vector<16x1xf32>
    %108 = vector.broadcast %107 : vector<16x1xf32> to vector<16x16xf32>
    %109 = arith.divf %105, %108 : vector<16x16xf32>
    %c0_57 = arith.constant 0 : index
    %c0_58 = arith.constant 0 : index
    %c0_59 = arith.constant 0 : index
    %110 = vector.load %arg13[%c0_57, %c0_58, %c0_59] : memref<3x16x16xf32, #tpu.memory_space<vmem>>, vector<1x16x16xf32>
    %111 = vector.shape_cast %110 : vector<1x16x16xf32> to vector<16x16xf32>
    %112 = arith.mulf %111, %109 : vector<16x16xf32>
    %113 = vector.extract_strided_slice %39 {offsets = [16, 0], sizes = [16, 4], strides = [1, 1]} : vector<32x12xf32> to vector<16x4xf32>
    %cst_60 = arith.constant dense<0.000000e+00> : vector<16x4xf32>
    %114 = tpu.matmul %112, %113, %cst_60 {dimension_numbers = #tpu.dot_dimension_numbers<[1], [0], [0], [1], [0, 0, 1, 1], [], []>} : vector<16x16xf32>, vector<16x4xf32>, vector<16x4xf32> -> vector<16x4xf32>
    %c1_61 = arith.constant 1 : index
    %c0_62 = arith.constant 0 : index
    %c0_63 = arith.constant 0 : index
    %115 = vector.load %arg13[%c1_61, %c0_62, %c0_63] : memref<3x16x16xf32, #tpu.memory_space<vmem>>, vector<1x16x16xf32>
    %116 = vector.shape_cast %115 : vector<1x16x16xf32> to vector<16x16xf32>
    %117 = arith.mulf %116, %109 : vector<16x16xf32>
    %118 = vector.extract_strided_slice %39 {offsets = [16, 4], sizes = [16, 4], strides = [1, 1]} : vector<32x12xf32> to vector<16x4xf32>
    %cst_64 = arith.constant dense<0.000000e+00> : vector<16x4xf32>
    %119 = tpu.matmul %117, %118, %cst_64 {dimension_numbers = #tpu.dot_dimension_numbers<[1], [0], [0], [1], [0, 0, 1, 1], [], []>} : vector<16x16xf32>, vector<16x4xf32>, vector<16x4xf32> -> vector<16x4xf32>
    %120 = arith.addf %114, %119 : vector<16x4xf32>
    %c2_65 = arith.constant 2 : index
    %c0_66 = arith.constant 0 : index
    %c0_67 = arith.constant 0 : index
    %121 = vector.load %arg13[%c2_65, %c0_66, %c0_67] : memref<3x16x16xf32, #tpu.memory_space<vmem>>, vector<1x16x16xf32>
    %122 = vector.shape_cast %121 : vector<1x16x16xf32> to vector<16x16xf32>
    %123 = arith.mulf %122, %109 : vector<16x16xf32>
    %124 = vector.extract_strided_slice %39 {offsets = [16, 8], sizes = [16, 4], strides = [1, 1]} : vector<32x12xf32> to vector<16x4xf32>
    %cst_68 = arith.constant dense<0.000000e+00> : vector<16x4xf32>
    %125 = tpu.matmul %123, %124, %cst_68 {dimension_numbers = #tpu.dot_dimension_numbers<[1], [0], [0], [1], [0, 0, 1, 1], [], []>} : vector<16x16xf32>, vector<16x4xf32>, vector<16x4xf32> -> vector<16x4xf32>
    %126 = arith.addf %120, %125 : vector<16x4xf32>
    %cst_69 = arith.constant 0.000000e+00 : f32
    %127 = vector.broadcast %cst_69 : f32 to vector<16x4xf32>
    %128 = arith.maximumf %126, %127 : vector<16x4xf32>
    %c16 = arith.constant 16 : index
    %c0_70 = arith.constant 0 : index
    %129 = vector.load %arg15[%c16, %c0_70] : memref<32x4xf32, #tpu.memory_space<vmem>>, vector<16x4xf32>
    tpu.vector_store %arg15[%c16, %c0_70], %128 {strides = array<i32>} : memref<32x4xf32, #tpu.memory_space<vmem>>, vector<16x4xf32>,
    return
  }
  func.func @transform_0(%arg0: i32) -> i32 {
    %c0_i32 = arith.constant 0 : i32
    %c0_i32_0 = arith.constant 0 : i32
    return %c0_i32 : i32
  }
  func.func @transform_1(%arg0: i32) -> (i32, i32) {
    %c0_i32 = arith.constant 0 : i32
    %c0_i32_0 = arith.constant 0 : i32
    return %arg0, %c0_i32 : i32, i32
  }
  func.func @transform_2(%arg0: i32) -> (i32, i32) {
    %c0_i32 = arith.constant 0 : i32
    %c0_i32_0 = arith.constant 0 : i32
    return %arg0, %c0_i32 : i32, i32
  }
  func.func @transform_3(%arg0: i32) -> (i32, i32) {
    %c0_i32 = arith.constant 0 : i32
    %c0_i32_0 = arith.constant 0 : i32
    %c0_i32_1 = arith.constant 0 : i32
    return %c0_i32, %c0_i32_0 : i32, i32
  }
  func.func @transform_4(%arg0: i32) -> (i32, i32) {
    %c0_i32 = arith.constant 0 : i32
    %c0_i32_0 = arith.constant 0 : i32
    %c0_i32_1 = arith.constant 0 : i32
    return %c0_i32, %c0_i32_0 : i32, i32
  }
  func.func @transform_5(%arg0: i32) -> (i32, i32) {
    %c0_i32 = arith.constant 0 : i32
    %c0_i32_0 = arith.constant 0 : i32
    %c0_i32_1 = arith.constant 0 : i32
    return %c0_i32, %c0_i32_0 : i32, i32
  }
  func.func @transform_6(%arg0: i32) -> (i32, i32) {
    %c0_i32 = arith.constant 0 : i32
    %c0_i32_0 = arith.constant 0 : i32
    %c0_i32_1 = arith.constant 0 : i32
    return %c0_i32, %c0_i32_0 : i32, i32
  }
  func.func @transform_7(%arg0: i32) -> (i32, i32) {
    %c0_i32 = arith.constant 0 : i32
    %c0_i32_0 = arith.constant 0 : i32
    %c0_i32_1 = arith.constant 0 : i32
    return %c0_i32, %c0_i32_0 : i32, i32
  }
  func.func @transform_8(%arg0: i32) -> (i32, i32) {
    %c0_i32 = arith.constant 0 : i32
    %c0_i32_0 = arith.constant 0 : i32
    %c0_i32_1 = arith.constant 0 : i32
    return %c0_i32, %c0_i32_0 : i32, i32
  }
  func.func @transform_9(%arg0: i32) -> (i32, i32) {
    %c0_i32 = arith.constant 0 : i32
    %c0_i32_0 = arith.constant 0 : i32
    %c0_i32_1 = arith.constant 0 : i32
    return %c0_i32, %c0_i32_0 : i32, i32
  }
  func.func @transform_10(%arg0: i32) -> (i32, i32) {
    %c0_i32 = arith.constant 0 : i32
    %c0_i32_0 = arith.constant 0 : i32
    %c0_i32_1 = arith.constant 0 : i32
    return %c0_i32, %c0_i32_0 : i32, i32
  }
  func.func @transform_11(%arg0: i32) -> (i32, i32) {
    %c0_i32 = arith.constant 0 : i32
    %c0_i32_0 = arith.constant 0 : i32
    %c0_i32_1 = arith.constant 0 : i32
    return %c0_i32, %c0_i32_0 : i32, i32
  }
  func.func @transform_12(%arg0: i32) -> (i32, i32, i32) {
    %c0_i32 = arith.constant 0 : i32
    %c0_i32_0 = arith.constant 0 : i32
    %c0_i32_1 = arith.constant 0 : i32
    %c0_i32_2 = arith.constant 0 : i32
    return %c0_i32, %c0_i32_0, %c0_i32_1 : i32, i32, i32
  }
  func.func @transform_13(%arg0: i32) -> (i32, i32) {
    %c0_i32 = arith.constant 0 : i32
    %c0_i32_0 = arith.constant 0 : i32
    %c0_i32_1 = arith.constant 0 : i32
    return %c0_i32, %c0_i32_0 : i32, i32
  }
  func.func @transform_14(%arg0: i32) -> (i32, i32) {
    %c0_i32 = arith.constant 0 : i32
    %c0_i32_0 = arith.constant 0 : i32
    return %arg0, %c0_i32 : i32, i32
  }
}

</mosaic_0001>

<bundles_post_ra>
// kernel: controlled_gde_forward.1
= control target key start
LH: loop header
LB: loop body
LE: loop exit
PB: predicated region body
PF: predicated region fallthrough
CT: control target
= control target key end

     0   :  { %vm84_vm0 = vcmask 261120   ;;  %v2006_v3 = vmov 0   ;;  %v2007_v4 = vmov 1   ;;  %v2008_v21 = vmov 2   ;;  %s2336_s6 = inlined_call_operand.vmem [shape: f32[32,12], index: 6, kind: input, shape index: {}]   ;;  %s2337_s2 = inlined_call_operand.vmem [shape: f32[32,32], index: 2, kind: input, shape index: {}]   ;;  %s2338_s0 = inlined_call_operand.<no memory space> [shape: f32[1], index: 0, kind: input, shape index: {}]   ;;  %s2339_s3 = inlined_call_operand.vmem [shape: f32[16,3], index: 3, kind: input, shape index: {}]   ;;  %s2340_s4 = inlined_call_operand.vmem [shape: f32[16,3], index: 4, kind: input, shape index: {}]   ;;  %s2341_s8 = inlined_call_operand.vmem [shape: f32[4,8], index: 8, kind: input, shape index: {}]   ;;  %s2342_s13 = inlined_call_operand.vmem [shape: f32[4,12], index: 13, kind: input, shape index: {}]   ;;  %s2343_s1 = inlined_call_operand.vmem [shape: f32[32,4], index: 1, kind: input, shape index: {}]   ;;  %s2344_s7 = inlined_call_operand.vmem [shape: f32[1,4], index: 7, kind: input, shape index: {}]   ;;  %s2345_s5 = inlined_call_operand.vmem [shape: f32[1,4], index: 5, kind: input, shape index: {}]   ;;  %s2346_s9 = inlined_call_operand.vmem [shape: f32[1,4], index: 9, kind: input, shape index: {}]   ;;  %s2347_s11 = inlined_call_operand.vmem [shape: f32[16,16], index: 11, kind: input, shape index: {}]   ;;  %s2348_s10 = inlined_call_operand.vmem [shape: f32[16,16], index: 10, kind: input, shape index: {}]   ;;  %s2349_s12 = inlined_call_operand.vmem [shape: f32[3,16,16], index: 12, kind: input, shape index: {}]   ;;  %s2350_s14 = inlined_call_operand.vmem [shape: f32[32,4], index: 14, kind: output, shape index: {}]  }
   0x1   :  { %v80_v0 = vld [vmem:[%s2336_s6] sm:$0xff]  ;;  %v81_v1 = vld [vmem:[%s2336_s6 + $0x8] sm:$0xff]  ;;  %v82_v2 = vld [vmem:[%s2336_s6 + $0x10] sm:$0xff]  ;;  %1950 = vset.pattern.permute.xlu0 %v2006_v3  ;;  %1951 = vset.pattern.permute.xlu1 %v2007_v4  ;;  %v51_v5 = vstv %s2338_s0  ;;  %vm223_vm1 = vcmask 1043456   ;;  %vm210_vm2 = vcmask 31744   ;;  %vm471_vm3 = vcmask 7168  }
   0x2   :  { %v1869_v6 = vpack.c.bf16 %v81_v1, %v80_v0  ;;  %v83_v7 = vld [vmem:[%s2336_s6 + $0x18] sm:$0xff]  ;;  %v62_v8 = vld [vmem:[%s2337_s2] sm:$0xff]  ;;  %v50_v13 = vld [vmem:[%s2339_s3 + $0x8] sm:$0xff]  ;;  %vm565_vm5 = vcmask 64512   ;;  %vm669_vm7 = vcmask 130048  }
   0x3   :  { %v1873_v9 = vpack.c.bf16 %v83_v7, %v82_v2  ;;  %1763 = vmatprep.mubr.msk.f32.mxu0 %vm84_vm0, %v62_v8  ;;  %v49_v10 = vld [vmem:[%s2339_s3] sm:$0xff]  ;;  %v53_v14 = vmul.f32 %v51_v5, %v50_v13  ;;  %v55_v15 = vld [vmem:[%s2340_s4 + $0x8] sm:$0xff]  ;;  %v64_v19 = vld [vmem:[%s2337_s2 + $0x10] sm:$0xff] }
   0x4   :  { %1870 = vmatprep.subr.bf16.mxu0 %v1869_v6  ;;  %v52_v11 = vmul.f32 %v51_v5, %v49_v10  ;;  %v54_v12 = vld [vmem:[%s2340_s4] sm:$0xff]  ;;  %v63_v18 = vld [vmem:[%s2337_s2 + $0x8] sm:$0xff]  ;;  %v65_v20 = vld [vmem:[%s2337_s2 + $0x18] sm:$0xff] }
   0x5   :  { %1872 = vmatpush3.bf16.msra.mxu0 %v1869_v6  ;;  %v57_v17 = vadd.f32 %v55_v15, %v53_v14  ;;  %v209_v22 = vld [vmem:[%s2341_s8] sm:$0xf]  ;;  %v60_v25 = vld [vmem:[%s2343_s1 + $0x10] sm:$0xff]  ;;  %v59_v30 = vld [vmem:[%s2343_s1 + $0x8] sm:$0xff] }
   0x6   :  { %1874 = vmatprep.subr.bf16.mxu0 %v1873_v9  ;;  %v56_v16 = vadd.f32 %v54_v12, %v52_v11  ;;  %1769 = vmatprep.subr.msk.mxu1 %vm223_vm1, %v209_v22  ;;  %v370_v23 = vld [vmem:[%s2342_s13] sm:$0xf]  ;;  %v61_v31 = vld [vmem:[%s2343_s1 + $0x18] sm:$0xff]  ;;  %vm2183_vm4 = vmpackc.low %vm471_vm3, %vm471_vm3 }
   0x7   :  { %1770 = vmatpush3.msk.msra.mxu1 %vm223_vm1, %v209_v22  ;;  %v58_v24 = vld [vmem:[%s2343_s1] sm:$0xff]  ;;  %v668_v22 = vld [vmem:[%s2347_s11 + $0x8] sm:$0xff]  ;;  %vm2201_vm6 = vmpackc.low %vm565_vm5, %vm565_vm5 }
   0x8   :  { %68 = vperm.xlu0 %1950, %v56_v16   ;;  %198 = vperm.xlu1 %1951, %v56_v16   ;;  %v1639_v27 = vld [vmem:[%s2344_s7] ss:$0 sm:$0xff] }
   0x9   :  { %1876 = vmatpush3.bf16.msra.mxu0 %v1873_v9  ;;  %1777 = vmatprep.subr.msk.mxu1 %vm223_vm1, %v370_v23  ;;  %v1632_v42 = vld [vmem:[%s2345_s5] ss:$0 sm:$0xff]  ;;  %s2009_s5 = smov 124  }
   0xa   :  { %v1638_v50 = vld [vmem:[%s2346_s9] ss:$0 sm:$0xff] }
   0xc   :  { %1764 = vmatmul.mubr.msk.f32.vlgmr.msra.gmra.mrb[0].mxu0 %vm84_vm0, %v63_v18  ;;  %73 = vperm.xlu0 %1950, %v57_v17  }
   0xd   :  { %1766 = vmatprep.mubr.msk.f32.mxu0 %vm84_vm0, %v64_v19  ;;  %202 = vperm.xlu1 %1951, %v57_v17  }
  0x10   :  { %1767 = vmatmul.mubr.msk.f32.gmra.mrb[2].mxu0 %vm84_vm0, %v65_v20  ;;  %1952 = vset.pattern.permute.xlu0 %v2008_v21 }
  0x11   :  { %1953 = vset.pattern.permute.xlu1 %v2008_v21  ;;  %336 = vperm.xlu0 %1952, %v56_v16   ;;  %v667_v21 = vld [vmem:[%s2347_s11] sm:$0xff] }
  0x12   :  { %340 = vperm.xlu1 %1953, %v57_v17  }
  0x87   :  { %v69_v26 = vpop.permute.xlu0 %68  ;;  %v199_v41 = vpop.permute.xlu1 %198 }
  0x88   :  { %v76_v28 = vadd.f32 %v69_v26, %v58_v24  ;;  %v78_v29 = vadd.f32 %v69_v26, %v60_v25 }
  0x8a   :  { %v354_v32 = vmul.f32 %v1639_v27, %v76_v28  ;;  %v356_v33 = vmul.f32 %v1639_v27, %v78_v29  ;;  %v189_v45 = vmul.f32 %v1632_v42, %v76_v28  ;;  %v191_v54 = vmul.f32 %v1632_v42, %v78_v29 }
  0x8b   :  { %v74_v34 = vpop.permute.xlu0 %73 }
  0x8c   :  { %v77_v35 = vadd.f32 %v74_v34, %v59_v30  ;;  %v79_v36 = vadd.f32 %v74_v34, %v61_v31  ;;  %v358_v37 = vsel %vm210_vm2, %v354_v32, 0.0  ;;  %v203_v48 = vpop.permute.xlu1 %202  ;;  %v364_v6 = vsel %vm210_vm2, %v356_v33, 0.0 }
  0x8d   :  { %359 = vadd.xlane.f32.xlu0 %v358_v37 }
  0x8e   :  { %v355_v38 = vmul.f32 %v1639_v27, %v77_v35  ;;  %v357_v39 = vmul.f32 %v1639_v27, %v79_v36  ;;  %v190_v43 = vmul.f32 %v1632_v42, %v77_v35  ;;  %v192_v52 = vmul.f32 %v1632_v42, %v79_v36 }
  0x90   :  { %v361_v40 = vsel %vm210_vm2, %v355_v38, 0.0  ;;  %v337_v3 = vpop.permute.xlu0 %336  ;;  %v367_v8 = vsel %vm210_vm2, %v357_v39, 0.0 }
  0x91   :  { %362 = vadd.xlane.f32.xlu1 %v361_v40  ;;  %v341_v1 = vpop.permute.xlu1 %340 }
  0xdf   :  { %v1765_v44 = vpop.f32.mrb[0].mxu0 }
  0xe0   :  { %v194_v46 = vadd.f32 %v1765_v44, %v190_v43  ;;  %v163_v47 = vpop.f32.mrb[1].mxu0  ;;  %v344_v2 = vadd.f32 %v1765_v44, %v341_v1  ;;  %v652_v44 = vld [vmem:[%s2348_s10 + $0x8] sm:$0xff] }
  0xe1   :  { %v193_v49 = vadd.f32 %v189_v45, %v163_v47  ;;  %v343_v4 = vadd.f32 %v337_v3, %v163_v47  ;;  %v651_v45 = vld [vmem:[%s2348_s10] sm:$0xff]  ;;  %s2010_s10 = smov 120  }
  0xe2   :  { %v206_v51 = vadd.f32 %v203_v48, %v194_v46 }
  0xe3   :  { %v1768_v53 = vpop.f32.mrb[2].mxu0  ;;  %v205_v55 = vadd.f32 %v199_v41, %v193_v49 }
  0xe4   :  { %v196_v56 = vadd.f32 %v1768_v53, %v192_v52  ;;  %v173_v57 = vpop.f32.mrb[3].mxu0  ;;  %v320_v58 = vmul.f32 %v1638_v50, %v206_v51  ;;  %v346_v12 = vadd.f32 %v1768_v53, %v341_v1 }
  0xe5   :  { %v195_v59 = vadd.f32 %v191_v54, %v173_v57  ;;  %1771 = vmatprep.mubr.msk.f32.mxu1 %vm210_vm2, %v205_v55  ;;  %v319_v60 = vmul.f32 %v1638_v50, %v205_v55  ;;  %v345_v13 = vadd.f32 %v337_v3, %v173_v57 }
  0xe6   :  { %1772 = vmatmul.mubr.msk.f32.vlgmr.msra.gmra.mrb[0].mxu1 %vm210_vm2, %v206_v51  ;;  %v326_v61 = vsel %vm210_vm2, %v320_v58, 0.0  ;;  %v208_v0 = vadd.f32 %v203_v48, %v196_v56 }
  0xe7   :  { %v207_v62 = vadd.f32 %v199_v41, %v195_v59  ;;  %327 = vadd.xlane.f32.xlu0 %v326_v61  ;;  %v323_v63 = vsel %vm210_vm2, %v319_v60, 0.0  ;;  %1778 = vmatpush3.msk.msra.mxu1 %vm223_vm1, %v370_v23 }
  0xe8   :  { %324 = vadd.xlane.f32.xlu1 %v323_v63  ;;  %v322_v7 = vmul.f32 %v1638_v50, %v208_v0 }
  0xe9   :  { %1774 = vmatprep.mubr.msk.f32.mxu1 %vm210_vm2, %v207_v62  ;;  %v321_v9 = vmul.f32 %v1638_v50, %v207_v62 }
  0xea   :  { %1775 = vmatmul.mubr.msk.f32.gmra.mrb[2].mxu1 %vm210_vm2, %v208_v0  ;;  %v332_v10 = vsel %vm210_vm2, %v322_v7, 0.0 }
  0xeb   :  { %1779 = vmatprep.mubr.msk.f32.mxu1 %vm210_vm2, %v76_v28  ;;  %v329_v11 = vsel %vm210_vm2, %v321_v9, 0.0  ;;  %v2205_v28 = vpack.c.bf16 %v668_v22, %v667_v21 }
  0xee   :  { %1780 = vmatmul.mubr.msk.f32.vlgmr.msra.gmra.mrb[4].mxu1 %vm210_vm2, %v77_v35 }
  0xef   :  { %1782 = vmatprep.mubr.msk.f32.mxu1 %vm210_vm2, %v78_v29 }
  0xf2   :  { %1783 = vmatmul.mubr.msk.f32.gmra.mrb[6].mxu1 %vm210_vm2, %v79_v36 }
  0xf9   :  { %563 = vrot.lane.b32.xlu1 %v344_v2, %s2009_s5 }
  0xfd   :  { %561 = vrot.lane.b32.xlu0 %v343_v4, %s2009_s5 }
 0x11a   :  { %v360_v5 = vpop.xlane.xlu0 %359 }
 0x11b   :  { %1789 = vmatprep.mubr.msk.f32.mxu0 %vm471_vm3, %v360_v5 }
 0x11c   :  { %365 = vadd.xlane.f32.xlu0 %v364_v6 }
 0x11d   :  { %368 = vadd.xlane.f32.xlu1 %v367_v8 }
 0x11e   :  { %v363_v14 = vpop.xlane.xlu1 %362 }
 0x120   :  { %333 = vadd.xlane.f32.xlu0 %v332_v10 }
 0x121   :  { %330 = vadd.xlane.f32.xlu1 %v329_v11 }
 0x132   :  { %1141 = vrot.lane.b32.xlu1 %v346_v12, %s2009_s5 }
 0x136   :  { %1139 = vrot.lane.b32.xlu0 %v345_v13, %s2009_s5 }
 0x174   :  { %v328_v15 = vpop.xlane.xlu0 %327 }
 0x175   :  { %v325_v16 = vpop.xlane.xlu1 %324 }
 0x176   :  { %v1877_v18 = vpack.c.bf16 %v328_v15, %v325_v16 }
 0x178   :  { %1879 = vmatprep.subr.msk.bf16.mxu0 %vm2183_vm4, %v1877_v18  ;;  %v562_v19 = vpop.permute.xlu0 %561 }
 0x179   :  { %1882 = vmatpush3.bf16.xpose.msk.msra.mxu0 %vm2183_vm4, %v1877_v18  ;;  %v564_v20 = vpop.permute.xlu1 %563 }
 0x180   :  { %1790 = vmatmul.mubr.msk.f32.vlgmr.msra.gmra.mrb[4].mxu0 %vm471_vm3, %v363_v14 }
 0x181   :  { %1796 = vmatprep.mubr.msk.f32.mxu0 %vm565_vm5, %v562_v19 }
 0x1a9   :  { %v366_v26 = vpop.xlane.xlu0 %365 }
 0x1aa   :  { %v369_v29 = vpop.xlane.xlu1 %368 }
 0x1ad   :  { %v334_v33 = vpop.xlane.xlu0 %333 }
 0x1ae   :  { %v331_v35 = vpop.xlane.xlu1 %330 }
 0x1af   :  { %v1905_v39 = vpack.c.bf16 %v334_v33, %v331_v35 }
 0x1b1   :  { %v1140_v58 = vpop.permute.xlu0 %1139 }
 0x1b2   :  { %v1142_v59 = vpop.permute.xlu1 %1141 }
 0x1b9   :  { %v1773_v23 = vpop.f32.mrb[0].mxu1 }
 0x1ba   :  { %v293_v24 = vpop.f32.mrb[1].mxu1 }
 0x1bb   :  { %v1883_v27 = vpack.c.bf16 %v1773_v23, %v293_v24 }
 0x1bd   :  { %v1776_v30 = vpop.f32.mrb[2].mxu1  ;;  %1885 = vmatprep.subr.msk.bf16.mxu0 %vm2201_vm6, %v1883_v27 }
 0x1be   :  { %v303_v31 = vpop.f32.mrb[3].mxu1  ;;  %1888 = vmatpush3.bf16.xpose.msk.msra.mxu0 %vm2201_vm6, %v1883_v27  ;;  %v2259_v27 = vld [vmem:[%s2349_s12 + $0x18] sm:$0xff] }
 0x1bf   :  { %v1911_v32 = vpack.c.bf16 %v1776_v30, %v303_v31  ;;  %1890 = vmatprep.subr.bf16.mxu0 %v2205_v28 }
 0x1c1   :  { %v1781_v34 = vpop.f32.mrb[4].mxu1 }
 0x1c2   :  { %v452_v36 = vpop.f32.mrb[5].mxu1 }
 0x1c3   :  { %v2212_v37 = vpack.i.bf16 %v1781_v34, %v452_v36  ;;  %v2214_v38 = vpack.c.bf16 %v1781_v34, %v452_v36 }
 0x1c5   :  { %v1784_v40 = vpop.f32.mrb[6].mxu1  ;;  %1797 = vmatmul.mubr.msk.f32.vlgmr.msra.gmra.mrb[4].mxu0 %vm565_vm5, %v564_v20 }
 0x1c6   :  { %v462_v41 = vpop.f32.mrb[7].mxu1  ;;  %1892 = vmatpush3.bf16.msra.mxu0 %v2205_v28 }
 0x1c7   :  { %v2218_v42 = vpack.i.bf16 %v1784_v40, %v462_v41  ;;  %v2220_v43 = vpack.c.bf16 %v1784_v40, %v462_v41  ;;  %1907 = vmatprep.subr.msk.bf16.mxu0 %vm2183_vm4, %v1905_v39  ;;  %v2276_v41 = vld [vmem:[%s2349_s12 + $0x8] sm:$0xff] }
 0x298   :  { %v1798_v46 = vpop.f32.mrb[4].mxu0 }
 0x299   :  { %v654_v47 = vadd.f32 %v1798_v46, %v652_v44  ;;  %v642_v48 = vpop.f32.mrb[5].mxu0 }
 0x29a   :  { %v653_v49 = vadd.f32 %v651_v45, %v642_v48 }
 0x29b   :  { %v1654_v50 = vmul.f32 -1.442695, %v654_v47  ;;  %v2291_v47 = vld [vmem:[%s2349_s12 + $0x28] sm:$0xff] }
 0x29c   :  { %v1653_v51 = vmul.f32 -1.442695, %v653_v49 }
 0x29d   :  { %1974 = vpow2.f32 %v1654_v50 }
 0x29e   :  { %1976 = vpow2.f32 %v1653_v51 }
 0x2a7   :  { %v1975_v52 = vpop.eup %1974 }
 0x2a8   :  { %v1977_v53 = vpop.eup %1976  ;;  %v662_v54 = vadd.f32 1.0, %v1975_v52 }
 0x2a9   :  { %v661_v55 = vadd.f32 1.0, %v1977_v53 }
 0x2ab   :  { %1978 = vrcp.f32 %v661_v55 }
 0x2ac   :  { %1980 = vrcp.f32 %v662_v54 }
 0x2b5   :  { %v1979_v56 = vpop.eup %1978 }
 0x2b6   :  { %v1981_v57 = vpop.eup %1980  ;;  %1803 = vmatprep.mubr.msk.f32.mxu0 %vm669_vm7, %v1979_v56 }
 0x2b7   :  { %1804 = vmatmul.mubr.msk.f32.vlgmr.msra.gmra.mrb[6].mxu0 %vm669_vm7, %v1981_v57 }
 0x2b8   :  { %1910 = vmatpush3.bf16.xpose.msk.msra.mxu0 %vm2183_vm4, %v1905_v39  ;;  %1831 = vmatprep.mubr.msk.f32.mxu0 %vm471_vm3, %v366_v26  ;;  %v2254_v26 = vld [vmem:[%s2349_s12 + $0x10] sm:$0xff] }
 0x2b9   :  { %1913 = vmatprep.subr.msk.bf16.mxu0 %vm2201_vm6, %v1911_v32 }
 0x2bf   :  { %1832 = vmatmul.mubr.msk.f32.vlgmr.msra.gmra.mrb[8].mxu0 %vm471_vm3, %v369_v29 }
 0x2c0   :  { %1916 = vmatpush3.bf16.xpose.msk.msra.mxu0 %vm2201_vm6, %v1911_v32  ;;  %1838 = vmatprep.mubr.msk.f32.mxu0 %vm565_vm5, %v1140_v58  ;;  %v2264_v32 = vld [vmem:[%s2349_s12] sm:$0xff] }
 0x2c7   :  { %1839 = vmatmul.mubr.msk.f32.vlgmr.msra.gmra.mrb[8].mxu0 %vm565_vm5, %v1142_v59 }
 0x38a   :  { %v1805_v60 = vpop.f32.mrb[6].mxu0 }
 0x38b   :  { %v742_v61 = vpop.f32.mrb[7].mxu0  ;;  %v754_v62 = vsel %vm669_vm7, %v1805_v60, -inf }
 0x38c   :  { %755 = vmax.xlane.f32.xlu0 %v754_v62  ;;  %v751_v63 = vsel %vm669_vm7, %v742_v61, -inf }
 0x38d   :  { %752 = vmax.xlane.f32.xlu1 %v751_v63 }
 0x39a   :  { %v1840_v0 = vpop.f32.mrb[8].mxu0 }
 0x39b   :  { %v1219_v1 = vpop.f32.mrb[9].mxu0  ;;  %v1231_v15 = vadd.f32 %v1840_v0, %v652_v44  ;;  %v2281_v44 = vld [vmem:[%s2349_s12 + $0x20] sm:$0xff] }
 0x39c   :  { %v1230_v12 = vadd.f32 %v1219_v1, %v651_v45 }
 0x39d   :  { %v1676_v18 = vmul.f32 -1.442695, %v1231_v15 }
 0x39e   :  { %v1675_v16 = vmul.f32 -1.442695, %v1230_v12 }
 0x419   :  { %v756_v2 = vpop.xlane.xlu0 %755 }
 0x41a   :  { %v758_v3 = vsub.f32 %v1805_v60, %v756_v2  ;;  %v753_v4 = vpop.xlane.xlu1 %752 }
 0x41b   :  { %v757_v5 = vsub.f32 %v742_v61, %v753_v4 }
 0x41c   :  { %v761_v6 = vmul.f32 1.442695, %v758_v3 }
 0x41d   :  { %v759_v7 = vmul.f32 1.442695, %v757_v5 }
 0x41e   :  { %1982 = vpow2.f32 %v761_v6 }
 0x41f   :  { %1984 = vpow2.f32 %v759_v7 }
 0x428   :  { %v1983_v8 = vpop.eup %1982 }
 0x429   :  { %v1985_v9 = vpop.eup %1984  ;;  %v766_v10 = vsel %vm669_vm7, %v1983_v8, 0.0 }
 0x42a   :  { %767 = vadd.xlane.f32.xlu1 %v766_v10  ;;  %v763_v11 = vsel %vm669_vm7, %v1985_v9, 0.0 }
 0x42b   :  { %764 = vadd.xlane.f32.xlu0 %v763_v11 }
 0x43b   :  { %1960 = vrot.lane.b32.xlu1 %v2212_v37, %s2010_s10 }
 0x441   :  { %1955 = vrot.lane.b32.xlu0 %v2212_v37, %s2009_s5 }
 0x4b7   :  { %v768_v13 = vpop.xlane.xlu1 %767 }
 0x4b8   :  { %1986 = vrcp.f32 %v768_v13  ;;  %v765_v14 = vpop.xlane.xlu0 %764 }
 0x4b9   :  { %1988 = vrcp.f32 %v765_v14 }
 0x4ba   :  { %1990 = vpow2.f32 %v1675_v16 }
 0x4bb   :  { %1992 = vpow2.f32 %v1676_v18  ;;  %v1961_v23 = vpop.permute.xlu1 %1960 }
 0x4bc   :  { %v1956_v17 = vpop.permute.xlu0 %1955  ;;  %v1963_v30 = vunpack.i.h.bf16 %v1961_v23  ;;  %v1962_v31 = vunpack.i.l.bf16 %v1961_v23 }
 0x4bd   :  { %v1958_v19 = vunpack.i.h.bf16 %v1956_v17  ;;  %v1957_v20 = vunpack.i.l.bf16 %v1956_v17 }
 0x4be   :  { %v1901_v37 = vpack.c.bf16 %v1963_v30, %v1962_v31 }
 0x4bf   :  { %v1893_v21 = vpack.c.bf16 %v1958_v19, %v1957_v20 }
 0x4c1   :  { %1894 = vmatprep.subr.bf16.mxu1 %v1893_v21 }
 0x4c2   :  { %v1987_v22 = vpop.eup %1986  ;;  %1896 = vmatpush3.bf16.msra.mxu1 %v1893_v21 }
 0x4c3   :  { %v1989_v24 = vpop.eup %1988  ;;  %v772_v25 = vmul.f32 %v1987_v22, %v1983_v8  ;;  %1898 = vmatprep.subr.bf16.mxu1 %v2214_v38 }
 0x4c4   :  { %v770_v29 = vmul.f32 %v1989_v24, %v1985_v9  ;;  %v1991_v35 = vpop.eup %1990 }
 0x4c5   :  { %v781_v34 = vmul.f32 %v2259_v27, %v772_v25  ;;  %v1993_v39 = vpop.eup %1992  ;;  %v1238_v40 = vadd.f32 1.0, %v1991_v35  ;;  %v776_v46 = vmul.f32 %v2276_v41, %v772_v25  ;;  %v956_v48 = vmul.f32 %v2291_v47, %v772_v25 }
 0x4c6   :  { %v780_v33 = vmul.f32 %v2254_v26, %v770_v29  ;;  %v775_v36 = vmul.f32 %v2264_v32, %v770_v29  ;;  %v1239_v45 = vadd.f32 1.0, %v1993_v39 }
 0x4c7   :  { %1994 = vrcp.f32 %v1238_v40 }
 0x4c8   :  { %1810 = vmatprep.mubr.msk.f32.mxu1 %vm669_vm7, %v780_v33  ;;  %1996 = vrcp.f32 %v1239_v45 }
 0x4c9   :  { %1811 = vmatmul.mubr.msk.f32.vlgmr.msra.gmra.mrb[8].mxu1 %vm669_vm7, %v781_v34 }
 0x4ca   :  { %1900 = vmatpush3.bf16.msra.mxu1 %v2214_v38  ;;  %1817 = vmatprep.mubr.msk.f32.mxu1 %vm669_vm7, %v775_v36  ;;  %v955_v38 = vmul.f32 %v2281_v44, %v770_v29 }
 0x4cb   :  { %1902 = vmatprep.subr.bf16.mxu1 %v1901_v37 }
 0x4d1   :  { %1818 = vmatmul.mubr.msk.f32.vlgmr.msra.gmra.mrb[8].mxu1 %vm669_vm7, %v776_v46  ;;  %v1995_v49 = vpop.eup %1994 }
 0x4d2   :  { %1904 = vmatpush3.bf16.msra.mxu1 %v1901_v37  ;;  %1824 = vmatprep.mubr.msk.f32.mxu1 %vm669_vm7, %v955_v38  ;;  %v1997_v50 = vpop.eup %1996 }
 0x4d3   :  { %1918 = vmatprep.subr.bf16.mxu1 %v2205_v28 }
 0x4d9   :  { %1825 = vmatmul.mubr.msk.f32.vlgmr.msra.gmra.mrb[8].mxu1 %vm669_vm7, %v956_v48 }
 0x4da   :  { %1920 = vmatpush3.bf16.msra.mxu1 %v2205_v28  ;;  %1845 = vmatprep.mubr.msk.f32.mxu1 %vm669_vm7, %v1995_v49 }
 0x4dd   :  { %1846 = vmatmul.mubr.msk.f32.vlgmr.msra.gmra.mrb[10].mxu1 %vm669_vm7, %v1997_v50 }
 0x5ac   :  { %v1826_v51 = vpop.f32.mrb[8].mxu1 }
 0x5ad   :  { %v1047_v52 = vmax.f32 %v1826_v51, 0.0  ;;  %v1035_v53 = vpop.f32.mrb[9].mxu1 }
 0x5ae   :  { %v1046_v54 = vmax.f32 %v1035_v53, 0.0 }
 0x5af   :  { %1049 = vst.msk [vmem:[%s2350_s14 + $0x8] sm:$0xff] %vm210_vm2, %v1047_v52 }
 0x5b0   :  { %1048 = vst.msk [vmem:[%s2350_s14] sm:$0xff] %vm210_vm2, %v1046_v54  ;;  %v1847_v28 = vpop.f32.mrb[10].mxu1 }
 0x5b1   :  { %v1318_v55 = vpop.f32.mrb[11].mxu1  ;;  %v1330_v56 = vsel %vm669_vm7, %v1847_v28, -inf }
 0x5b2   :  { %1331 = vmax.xlane.f32.xlu0 %v1330_v56  ;;  %v1327_v57 = vsel %vm669_vm7, %v1318_v55, -inf }
 0x5b3   :  { %1328 = vmax.xlane.f32.xlu1 %v1327_v57 }
 0x63f   :  { %v1332_v58 = vpop.xlane.xlu0 %1331 }
 0x640   :  { %v1334_v59 = vsub.f32 %v1847_v28, %v1332_v58  ;;  %v1329_v60 = vpop.xlane.xlu1 %1328 }
 0x641   :  { %v1333_v61 = vsub.f32 %v1318_v55, %v1329_v60 }
 0x642   :  { %v1337_v62 = vmul.f32 1.442695, %v1334_v59 }
 0x643   :  { %v1335_v63 = vmul.f32 1.442695, %v1333_v61 }
 0x644   :  { %1998 = vpow2.f32 %v1337_v62 }
 0x645   :  { %2000 = vpow2.f32 %v1335_v63 }
 0x64e   :  { %v1999_v0 = vpop.eup %1998 }
 0x64f   :  { %v2001_v1 = vpop.eup %2000  ;;  %v1342_v2 = vsel %vm669_vm7, %v1999_v0, 0.0 }
 0x650   :  { %1343 = vadd.xlane.f32.xlu1 %v1342_v2  ;;  %v1339_v3 = vsel %vm669_vm7, %v2001_v1, 0.0 }
 0x651   :  { %1340 = vadd.xlane.f32.xlu0 %v1339_v3 }
 0x661   :  { %1970 = vrot.lane.b32.xlu1 %v2218_v42, %s2010_s10 }
 0x667   :  { %1965 = vrot.lane.b32.xlu0 %v2218_v42, %s2009_s5 }
 0x6dd   :  { %v1344_v4 = vpop.xlane.xlu1 %1343 }
 0x6de   :  { %2002 = vrcp.f32 %v1344_v4  ;;  %v1341_v5 = vpop.xlane.xlu0 %1340 }
 0x6df   :  { %2004 = vrcp.f32 %v1341_v5 }
 0x6e1   :  { %v1971_v11 = vpop.permute.xlu1 %1970 }
 0x6e2   :  { %v1966_v6 = vpop.permute.xlu0 %1965  ;;  %v1973_v15 = vunpack.i.h.bf16 %v1971_v11  ;;  %v1972_v16 = vunpack.i.l.bf16 %v1971_v11 }
 0x6e3   :  { %v1968_v7 = vunpack.i.h.bf16 %v1966_v6  ;;  %v1967_v8 = vunpack.i.l.bf16 %v1966_v6 }
 0x6e4   :  { %v1929_v19 = vpack.c.bf16 %v1973_v15, %v1972_v16 }
 0x6e5   :  { %v1921_v9 = vpack.c.bf16 %v1968_v7, %v1967_v8 }
 0x6e7   :  { %1922 = vmatprep.subr.bf16.mxu1 %v1921_v9 }
 0x6e8   :  { %v2003_v10 = vpop.eup %2002  ;;  %1924 = vmatpush3.bf16.msra.mxu1 %v1921_v9 }
 0x6e9   :  { %v2005_v12 = vpop.eup %2004  ;;  %v1348_v13 = vmul.f32 %v2003_v10, %v1999_v0  ;;  %1926 = vmatprep.subr.bf16.mxu1 %v2220_v43 }
 0x6ea   :  { %v1346_v14 = vmul.f32 %v2005_v12, %v2001_v1 }
 0x6eb   :  { %v1356_v17 = vmul.f32 %v2259_v27, %v1348_v13  ;;  %v1352_v20 = vmul.f32 %v1348_v13, %v2276_v41  ;;  %v1530_v22 = vmul.f32 %v2291_v47, %v1348_v13 }
 0x6ec   :  { %v1355_v42 = vmul.f32 %v2254_v26, %v1346_v14  ;;  %v1351_v18 = vmul.f32 %v1346_v14, %v2264_v32  ;;  %v1529_v21 = vmul.f32 %v2281_v44, %v1346_v14 }
 0x6ee   :  { %1852 = vmatprep.mubr.msk.f32.mxu1 %vm669_vm7, %v1355_v42 }
 0x6ef   :  { %1853 = vmatmul.mubr.msk.f32.vlgmr.msra.gmra.mrb[12].mxu1 %vm669_vm7, %v1356_v17 }
 0x6f0   :  { %1928 = vmatpush3.bf16.msra.mxu1 %v2220_v43  ;;  %1859 = vmatprep.mubr.msk.f32.mxu1 %vm669_vm7, %v1351_v18 }
 0x6f1   :  { %1930 = vmatprep.subr.bf16.mxu1 %v1929_v19 }
 0x6f7   :  { %1860 = vmatmul.mubr.msk.f32.vlgmr.msra.gmra.mrb[12].mxu1 %vm669_vm7, %v1352_v20 }
 0x6f8   :  { %1932 = vmatpush3.bf16.msra.mxu1 %v1929_v19  ;;  %1866 = vmatprep.mubr.msk.f32.mxu1 %vm669_vm7, %v1529_v21 }
 0x6ff   :  { %1867 = vmatmul.mubr.msk.f32.vlgmr.msra.gmra.mrb[12].mxu1 %vm669_vm7, %v1530_v22 }
 0x7d2   :  { %v1868_v23 = vpop.f32.mrb[12].mxu1 }
 0x7d3   :  { %v1621_v24 = vmax.f32 %v1868_v23, 0.0  ;;  %v1609_v25 = vpop.f32.mrb[13].mxu1 }
 0x7d4   :  { %v1620_v43 = vmax.f32 %v1609_v25, 0.0 }
 0x7d5   :  { %1623 = vst.msk [vmem:[%s2350_s14 + $0x18] sm:$0xff] %vm210_vm2, %v1621_v24 }
 0x7d6   :  { %1622 = vst.msk [vmem:[%s2350_s14 + $0x10] sm:$0xff] %vm210_vm2, %v1620_v43 }

</bundles_post_ra>
